<compile_context>
chip_gen: v7x
topology: tpu7x:2x2x1
jax: 0.10.0
libtpu: 0.0.40
codegen_flags: <defaults>
</compile_context>

<pallas_src>
import jax
import jax.numpy as jnp
from jax.experimental import pallas as pl
from jax.experimental.pallas import tpu as pltpu


def _round_up(x, m):
    return ((x + m - 1) // m) * m


def _se_block_kernel(x_ref, w1_ref, b1_ref, w2_ref, b2_ref, o_ref):
    # x_ref : [TILE_R, C_in]      f32 (native dtype; cast to bf16 here)
    # w1_ref: [C_in, C_mid_pad]   bf16,  b1_ref: [1, C_mid_pad] f32
    # w2_ref: [C_mid_pad, C_out]  bf16,  b2_ref: [1, C_out]     f32
    # o_ref : [TILE_R, C_out]     f32 (or requested out dtype)
    x = x_ref[...].astype(jnp.bfloat16)

    # conv2d31 (1x1) + ReLU  -> MXU matmul (bf16 in, f32 acc) + VPU max
    h = jnp.dot(x, w1_ref[...], preferred_element_type=jnp.float32)
    h = jnp.maximum(h + b1_ref[...], 0.0)

    # conv2d32 (1x1) + Sigmoid (bf16 MXU inputs, f32 accumulation, EUP exp)
    y = jnp.dot(h.astype(jnp.bfloat16), w2_ref[...],
                preferred_element_type=jnp.float32)
    y = jax.nn.sigmoid(y + b2_ref[...])

    o_ref[...] = y.astype(o_ref.dtype)


def se_block(x_nchw, w1, b1, w2, b2, *, tile_r_max=2048, out_dtype=jnp.float32):
    """Fused (1x1 conv -> relu -> 1x1 conv -> sigmoid) forward pass.

    x_nchw: [N, C_in, H, W] float32
    w1:     [C_mid, C_in] (PyTorch Conv2d weight squeezed), b1: [C_mid]
    w2:     [C_out, C_mid],                                 b2: [C_out]
    returns [N, C_out, H, W] in `out_dtype` (f32 default to match the module;
    bf16 is numerically safe for this sigmoid gate and halves write traffic).
    """
    n, c_in, h, w = x_nchw.shape
    c_mid = w1.shape[0]
    c_out = w2.shape[0]
    rows = n * h * w

    # ---- wrapper-side layout prep ------------------------------------------
    # NCHW -> [rows, C_in] with channels on the lane axis. For the actual
    # regnet SE case (H=W=1) this is a pure reshape, no transpose copy.
    # x stays f32: the bf16 cast happens inside the kernel.
    if h == 1 and w == 1:
        x_rows = x_nchw.reshape(rows, c_in)
    else:
        x_rows = jnp.transpose(x_nchw, (0, 2, 3, 1)).reshape(rows, c_in)

    # Weight prep (tiny tensors; for a static model this would be hoisted out
    # of the per-call path): transpose to [in, out] for x @ W, cast to bf16,
    # and pad the hidden dim 52 -> 64. Zero-padded hidden channels produce
    # relu(0 + 0) = 0 and multiply into zero w2 rows, so the math is unchanged.
    c_mid_pad = _round_up(c_mid, 64)
    w1_m = jnp.transpose(w1, (1, 0)).astype(jnp.bfloat16)   # [C_in, C_mid]
    w2_m = jnp.transpose(w2, (1, 0)).astype(jnp.bfloat16)   # [C_mid, C_out]
    b1_m = b1.reshape(1, c_mid).astype(jnp.float32)
    b2_m = b2.reshape(1, c_out).astype(jnp.float32)
    if c_mid_pad != c_mid:
        w1_m = jnp.pad(w1_m, ((0, 0), (0, c_mid_pad - c_mid)))
        b1_m = jnp.pad(b1_m, ((0, 0), (0, c_mid_pad - c_mid)))
        w2_m = jnp.pad(w2_m, ((0, c_mid_pad - c_mid), (0, 0)))

    # Row tiling. No padding or slicing of x / out: Pallas masks the ragged
    # last block (partial reads are harmless per-row garbage, partial writes
    # are masked). Force >= 2 tiles whenever there is enough work so the
    # "parallel" axis can feed both TensorCores on v7x; balance tile sizes to
    # avoid a nearly-empty trailing tile.
    if rows >= 32:
        num_tiles = max(2, pl.cdiv(rows, tile_r_max))
        tile_r = min(tile_r_max, _round_up(pl.cdiv(rows, num_tiles), 16))
    else:
        tile_r = rows            # block dim equals full array dim -> legal
    grid = (pl.cdiv(rows, tile_r),)

    out_rows = pl.pallas_call(
        _se_block_kernel,
        out_shape=jax.ShapeDtypeStruct((rows, c_out), out_dtype),
        grid_spec=pltpu.PrefetchScalarGridSpec(
            num_scalar_prefetch=0,
            grid=grid,
            in_specs=[
                pl.BlockSpec((tile_r, c_in), lambda i: (i, 0)),       # x tile
                pl.BlockSpec((c_in, c_mid_pad), lambda i: (0, 0)),    # w1 (resident)
                pl.BlockSpec((1, c_mid_pad), lambda i: (0, 0)),       # b1 (resident)
                pl.BlockSpec((c_mid_pad, c_out), lambda i: (0, 0)),   # w2 (resident)
                pl.BlockSpec((1, c_out), lambda i: (0, 0)),           # b2 (resident)
            ],
            out_specs=pl.BlockSpec((tile_r, c_out), lambda i: (i, 0)),
        ),
        compiler_params=pltpu.CompilerParams(
            dimension_semantics=("parallel",),   # split row tiles across TCs on v7x
            vmem_limit_bytes=32 * 1024 * 1024,   # ~10 MiB working set at tile_r=2048
        ),
    )(x_rows, w1_m, b1_m, w2_m, b2_m)

    if h == 1 and w == 1:
        return out_rows.reshape(n, c_out, 1, 1)
    return jnp.transpose(out_rows.reshape(n, h, w, c_out), (0, 3, 1, 2))


def _init_params(key):
    # Deterministic init mimicking PyTorch Conv2d default (uniform(-k, k),
    # k = 1/sqrt(fan_in)) for kernel_size (1,1).
    k1, k2, k3, k4 = jax.random.split(key, 4)
    c_in, c_mid, c_out = 208, 52, 208

    bound1 = 1.0 / jnp.sqrt(jnp.float32(c_in))
    w1 = jax.random.uniform(k1, (c_mid, c_in), jnp.float32, -bound1, bound1)
    b1 = jax.random.uniform(k2, (c_mid,), jnp.float32, -bound1, bound1)

    bound2 = 1.0 / jnp.sqrt(jnp.float32(c_mid))
    w2 = jax.random.uniform(k3, (c_out, c_mid), jnp.float32, -bound2, bound2)
    b2 = jax.random.uniform(k4, (c_out,), jnp.float32, -bound2, bound2)
    return w1, b1, w2, b2


if __name__ == "__main__":
    key = jax.random.PRNGKey(0)
    k_x, k_p = jax.random.split(key)

    # Module's x96 is [1, 208, 1, 1]; use a small batch of 2 for the demo.
    n, c_in, hh, ww = 2, 208, 1, 1
    x = jax.random.normal(k_x, (n, c_in, hh, ww), dtype=jnp.float32)
    w1, b1, w2, b2 = _init_params(k_p)

    out = se_block(x, w1, b1, w2, b2)
    out = jax.block_until_ready(out)

    # Reference in plain JAX f32 (same math, no Pallas). bf16 MXU inputs ->
    # loose-ish tolerance; sigmoid keeps everything in (0, 1).
    x_rows = x.reshape(n, c_in)
    h_ref = jnp.maximum(x_rows @ w1.T + b1, 0.0)
    y_ref = jax.nn.sigmoid(h_ref @ w2.T + b2).reshape(n, 208, 1, 1)

    assert out.shape == (n, 208, 1, 1)
    assert out.dtype == jnp.float32
    assert jnp.allclose(out, y_ref, atol=2e-2, rtol=2e-2), (
        float(jnp.max(jnp.abs(out - y_ref))))

    # Also exercise the multi-tile / ragged-last-block path (grid=(2,), the
    # second row tile is partial and masked on writeback).
    n2 = 300
    x2 = jax.random.normal(jax.random.PRNGKey(1), (n2, c_in, 1, 1),
                           dtype=jnp.float32)
    out2 = jax.block_until_ready(se_block(x2, w1, b1, w2, b2))
    h2_ref = jnp.maximum(x2.reshape(n2, c_in) @ w1.T + b1, 0.0)
    y2_ref = jax.nn.sigmoid(h2_ref @ w2.T + b2).reshape(n2, 208, 1, 1)
    assert out2.shape == (n2, 208, 1, 1)
    assert jnp.allclose(out2, y2_ref, atol=2e-2, rtol=2e-2), (
        float(jnp.max(jnp.abs(out2 - y2_ref))))

    print("KERNEL_OK")
</pallas_src>

<mosaic_0001>
module attributes {stable_mosaic.version = 11 : i64} {
  func.func @_se_block_kernel(%arg0: i32, %arg1: memref<2x208xf32, #tpu.memory_space<vmem>>, %arg2: memref<208x64xbf16, #tpu.memory_space<vmem>>, %arg3: memref<1x64xf32, #tpu.memory_space<vmem>>, %arg4: memref<64x208xbf16, #tpu.memory_space<vmem>>, %arg5: memref<1x208xf32, #tpu.memory_space<vmem>>, %arg6: memref<2x208xf32, #tpu.memory_space<vmem>>) attributes {dimension_semantics = [#tpu.dimension_semantics<parallel>], iteration_bounds = array<i64: 1>, scalar_prefetch = 0 : i64, scratch_operands = 0 : i64, tpu.core_type = #tpu.core_type<tc>, window_params = [{transform_indices = @transform_0, window_bounds = array<i64: 2, 208>}, {pipeline_mode = #tpu.pipeline_mode<synchronous>, transform_indices = @transform_1, window_bounds = array<i64: 208, 64>}, {pipeline_mode = #tpu.pipeline_mode<synchronous>, transform_indices = @transform_2, window_bounds = array<i64: 1, 64>}, {pipeline_mode = #tpu.pipeline_mode<synchronous>, transform_indices = @transform_3, window_bounds = array<i64: 64, 208>}, {pipeline_mode = #tpu.pipeline_mode<synchronous>, transform_indices = @transform_4, window_bounds = array<i64: 1, 208>}, {transform_indices = @transform_5, window_bounds = array<i64: 2, 208>}]} {
    %c0 = arith.constant 0 : index
    %c0_0 = arith.constant 0 : index
    %0 = vector.load %arg1[%c0, %c0_0] : memref<2x208xf32, #tpu.memory_space<vmem>>, vector<2x208xf32>
    %1 = arith.truncf %0 : vector<2x208xf32> to vector<2x208xbf16>
    %c0_1 = arith.constant 0 : index
    %c0_2 = arith.constant 0 : index
    %2 = vector.load %arg2[%c0_1, %c0_2] : memref<208x64xbf16, #tpu.memory_space<vmem>>, vector<208x64xbf16>
    %cst = arith.constant dense<0.000000e+00> : vector<2x64xf32>
    %3 = tpu.matmul %1, %2, %cst {dimension_numbers = #tpu.dot_dimension_numbers<[1], [0], [0], [1], [0, 0, 1, 1], [], []>} : vector<2x208xbf16>, vector<208x64xbf16>, vector<2x64xf32> -> vector<2x64xf32>
    %c0_3 = arith.constant 0 : index
    %c0_4 = arith.constant 0 : index
    %4 = vector.load %arg3[%c0_3, %c0_4] : memref<1x64xf32, #tpu.memory_space<vmem>>, vector<1x64xf32>
    %5 = vector.broadcast %4 : vector<1x64xf32> to vector<2x64xf32>
    %6 = arith.addf %3, %5 : vector<2x64xf32>
    %cst_5 = arith.constant 0.000000e+00 : f32
    %7 = vector.broadcast %cst_5 : f32 to vector<2x64xf32>
    %8 = arith.maximumf %6, %7 : vector<2x64xf32>
    %9 = arith.truncf %8 : vector<2x64xf32> to vector<2x64xbf16>
    %c0_6 = arith.constant 0 : index
    %c0_7 = arith.constant 0 : index
    %10 = vector.load %arg4[%c0_6, %c0_7] : memref<64x208xbf16, #tpu.memory_space<vmem>>, vector<64x208xbf16>
    %cst_8 = arith.constant dense<0.000000e+00> : vector<2x208xf32>
    %11 = tpu.matmul %9, %10, %cst_8 {dimension_numbers = #tpu.dot_dimension_numbers<[1], [0], [0], [1], [0, 0, 1, 1], [], []>} : vector<2x64xbf16>, vector<64x208xbf16>, vector<2x208xf32> -> vector<2x208xf32>
    %c0_9 = arith.constant 0 : index
    %c0_10 = arith.constant 0 : index
    %12 = vector.load %arg5[%c0_9, %c0_10] : memref<1x208xf32, #tpu.memory_space<vmem>>, vector<1x208xf32>
    %13 = vector.broadcast %12 : vector<1x208xf32> to vector<2x208xf32>
    %14 = arith.addf %11, %13 : vector<2x208xf32>
    %15 = arith.negf %14 : vector<2x208xf32>
    %16 = math.exp %15 : vector<2x208xf32>
    %cst_11 = arith.constant 1.000000e+00 : f32
    %17 = vector.broadcast %cst_11 : f32 to vector<2x208xf32>
    %18 = arith.addf %17, %16 : vector<2x208xf32>
    %19 = arith.divf %17, %18 : vector<2x208xf32>
    %c0_12 = arith.constant 0 : index
    %c0_13 = arith.constant 0 : index
    %20 = vector.load %arg6[%c0_12, %c0_13] : memref<2x208xf32, #tpu.memory_space<vmem>>, vector<2x208xf32>
    tpu.vector_store %arg6[%c0_12, %c0_13], %19 {strides = array<i32>} : memref<2x208xf32, #tpu.memory_space<vmem>>, vector<2x208xf32>,
    return
  }
  func.func @transform_0(%arg0: i32) -> (i32, i32) {
    %c0_i32 = arith.constant 0 : i32
    %c0_i32_0 = arith.constant 0 : i32
    return %arg0, %c0_i32 : i32, i32
  }
  func.func @transform_1(%arg0: i32) -> (i32, i32) {
    %c0_i32 = arith.constant 0 : i32
    %c0_i32_0 = arith.constant 0 : i32
    %c0_i32_1 = arith.constant 0 : i32
    return %c0_i32, %c0_i32_0 : i32, i32
  }
  func.func @transform_2(%arg0: i32) -> (i32, i32) {
    %c0_i32 = arith.constant 0 : i32
    %c0_i32_0 = arith.constant 0 : i32
    %c0_i32_1 = arith.constant 0 : i32
    return %c0_i32, %c0_i32_0 : i32, i32
  }
  func.func @transform_3(%arg0: i32) -> (i32, i32) {
    %c0_i32 = arith.constant 0 : i32
    %c0_i32_0 = arith.constant 0 : i32
    %c0_i32_1 = arith.constant 0 : i32
    return %c0_i32, %c0_i32_0 : i32, i32
  }
  func.func @transform_4(%arg0: i32) -> (i32, i32) {
    %c0_i32 = arith.constant 0 : i32
    %c0_i32_0 = arith.constant 0 : i32
    %c0_i32_1 = arith.constant 0 : i32
    return %c0_i32, %c0_i32_0 : i32, i32
  }
  func.func @transform_5(%arg0: i32) -> (i32, i32) {
    %c0_i32 = arith.constant 0 : i32
    %c0_i32_0 = arith.constant 0 : i32
    return %arg0, %c0_i32 : i32, i32
  }
}

</mosaic_0001>

<bundles_post_ra>
// kernel: tpu_custom_call.1
= control target key start
LH: loop header
LB: loop body
LE: loop exit
PB: predicated region body
PF: predicated region fallthrough
CT: control target
= control target key end

     0   :  { %v426_v1 = vmov 0   ;;  %vm147_vm0 = vcmask 654336   ;;  %s543_s0 = inlined_call_operand.vmem [shape: f32[2,208], index: 0, kind: input, shape index: {}]   ;;  %s544_s1 = inlined_call_operand.vmem [shape: bf16[208,64], index: 1, kind: input, shape index: {}]   ;;  %s545_s2 = inlined_call_operand.vmem [shape: f32[1,64], index: 2, kind: input, shape index: {}]   ;;  %s546_s3 = inlined_call_operand.vmem [shape: bf16[64,208], index: 3, kind: input, shape index: {}]   ;;  %s547_s4 = inlined_call_operand.vmem [shape: f32[1,208], index: 4, kind: input, shape index: {}]   ;;  %s548_s5 = inlined_call_operand.hbm [shape: f32[2,208], index: 5, kind: output, shape index: {}]  }
   0x1   :  { %v369_v0 = vld [vmem:[%s544_s1] sm:$0xff]   ;;  %151 = vmatprep.subr.bf16.mxu0 %v426_v1  ;;  %289 = vmatprep.mubr.bf16.mxu1 %v426_v1  ;;  %v370_v2 = vld [vmem:[%s544_s1 + $0x8] sm:$0xff]   ;;  %v371_v3 = vld [vmem:[%s544_s1 + $0x10] sm:$0xff]  }
   0x2   :  { %152 = vmatpush1.bf16.msra.mxu0 %v369_v0  ;;  %v372_v4 = vld [vmem:[%s544_s1 + $0x18] sm:$0xff]   ;;  %v373_v5 = vld [vmem:[%s544_s1 + $0x20] sm:$0xff]   ;;  %v374_v13 = vld [vmem:[%s544_s1 + $0x28] sm:$0xff]  }
   0x3   :  { %153 = vmatprep.subr.bf16.mxu0 %v426_v1  ;;  %v339_v6 = vld.sshfl [vmem:[%s543_s0] sm:$0x33 pattern:$0x76325410]  ;;  %v382_v8 = vld [vmem:[%s546_s3 + $0x4] ss:$8 sps:$4 sm:$0xff]  }
   0x4   :  { %v31_v7 = vcombine.high %v339_v6, %v339_v6  ;;  %v384_v9 = vld [vmem:[%s546_s3] ss:$8 sps:$4 sm:$0xff]   ;;  %v385_v10 = vld [vmem:[%s546_s3 + $0x14] ss:$8 sps:$4 sm:$0xff]   ;;  %257 = vmatprep.subr.bf16.mxu1 %v382_v8  ;;  %v387_v12 = vld [vmem:[%s546_s3 + $0x10] ss:$8 sps:$4 sm:$0xff]  }
   0x5   :  { %258 = vmatpush1.bf16.msra.mxu1 %v384_v9  ;;  %v388_v14 = vld [vmem:[%s546_s3 + $0x24] ss:$8 sps:$4 sm:$0xff]  }
   0x6   :  { %154 = vmatpush1.bf16.msra.mxu0 %v370_v2  ;;  %v35_v11 = vpack.c.bf16 %v31_v7, %v31_v7 }
   0x7   :  { %155 = vmatprep.subr.bf16.mxu0 %v426_v1 }
   0x8   :  { %354 = vmatprep.mubr.msk.bf16.mxu0 %vm147_vm0, %v35_v11 }
   0xa   :  { %156 = vmatpush1.bf16.msra.mxu0 %v371_v3 }
   0xb   :  { %157 = vmatprep.subr.bf16.mxu0 %v426_v1 }
   0xe   :  { %158 = vmatpush1.bf16.msra.mxu0 %v372_v4 }
   0xf   :  { %159 = vmatprep.subr.bf16.mxu0 %v426_v1 }
  0x12   :  { %160 = vmatpush1.bf16.msra.mxu0 %v373_v5 }
  0x13   :  { %10 = vsyncpa [#allocation3], 0  ;;  %161 = vmatprep.subr.bf16.mxu0 %v426_v1  ;;  %259 = vmatprep.subr.bf16.mxu1 %v385_v10  ;;  %v375_v15 = vld [vmem:[%s544_s1 + $0x30] sm:$0xff]   ;;  %v376_v16 = vld [vmem:[%s544_s1 + $0x38] sm:$0xff]   ;;  %v34_v22 = vpack.c.bf16 %v339_v6, %v339_v6  ;;  %vm253_vm1 = vcmask 523264   ;;  %v203_v34 = vlaneseq  ;;  %vm321_vm2 = vcmask 1041408  }
  0x14   :  { %260 = vmatpush1.bf16.msra.mxu1 %v387_v12  ;;  %v377_v17 = vld [vmem:[%s544_s1 + $0x40] sm:$0xff]   ;;  %v378_v18 = vld [vmem:[%s544_s1 + $0x48] sm:$0xff]   ;;  %v379_v19 = vld [vmem:[%s544_s1 + $0x50] sm:$0xff]   ;;  %v427_v53 = vmov 1983009808   ;;  %vm322_vm3 = vcmask 650242  }
  0x15   :  { %261 = vmatprep.subr.bf16.mxu1 %v388_v14  ;;  %v380_v20 = vld [vmem:[%s544_s1 + $0x58] sm:$0xff]   ;;  %v381_v21 = vld [vmem:[%s544_s1 + $0x60] sm:$0xff]   ;;  %v204_v35 = vshrl.u32 %v203_v34, 7  ;;  %v314_v54 = vunpack.c.l.s4 %v427_v53  ;;  %vm323_vm4 = vmor %vm322_vm3, %vm321_vm2 }
  0x16   :  { %162 = vmatpush1.bf16.msra.mxu0 %v374_v13  ;;  %v390_v23 = vld [vmem:[%s546_s3 + $0x20] ss:$8 sps:$4 sm:$0xff]   ;;  %v391_v24 = vld [vmem:[%s546_s3 + $0x34] ss:$8 sps:$4 sm:$0xff]   ;;  %v393_v25 = vld [vmem:[%s546_s3 + $0x30] ss:$8 sps:$4 sm:$0xff]  }
  0x17   :  { %163 = vmatprep.subr.bf16.mxu0 %v426_v1  ;;  %v340_v26 = vld [vmem:[%s545_s2] ss:$0 sm:$0xff]  ;;  %v205_v36 = vsub.s32 0, %v204_v35  ;;  %v209_v38 = vsub.s32 1, %v204_v35  ;;  %v315_v55 = vunpack.c.0.s8 %v314_v54  ;;  %s428_s2 = smov [#allocation2]  }
  0x18   :  { %262 = vmatpush1.bf16.msra.mxu1 %v390_v23  ;;  %v201_v37 = vld [vmem:[%s547_s4] sm:$0x3]  ;;  %s331_s4 = sshll.u32 %s428_s2, 4  ;;  %s332_s4 = int_to_ptr.vmem [resolvable:$true] %s331_s4 }
  0x19   :  { %263 = vmatprep.subr.bf16.mxu1 %v391_v24  ;;  %v206_v39 = vrot.slane %v201_v37, %v205_v36  ;;  %v210_v40 = vrot.slane %v201_v37, %v209_v38  ;;  %v318_v57 = vsub.s32 %v315_v55, %v204_v35  ;;  %s402_s12 = scalar_lea.vmem %s332_s4, 64  ;;  %p407_p1 = scmp.lt.s32.totalorder %s332_s4, %s332_s4 }
  0x1a   :  { %164 = vmatpush1.bf16.msra.mxu0 %v375_v15  ;;  %p403_p0 = scmp.ne.s32.totalorder %s332_s4, %s402_s12  ;;  %p408_p2 = scmp.lt.s32.totalorder %s402_s12, %s402_s12 }
  0x1b   :  { %165 = vmatprep.subr.bf16.mxu0 %v426_v1 }
  0x1c   :  { %264 = vmatpush1.bf16.msra.mxu1 %v393_v25  ;;  %p409_p3 = por %p408_p2, %p407_p1 }
  0x1e   :  { %166 = vmatpush1.bf16.msra.mxu0 %v376_v16  ;;  %p410_p4 = pnand %p409_p3, %p403_p0 }
  0x1f   :  { %167 = vmatprep.subr.bf16.mxu0 %v426_v1 }
  0x22   :  { %168 = vmatpush1.bf16.msra.mxu0 %v377_v17 }
  0x23   :  { %169 = vmatprep.subr.bf16.mxu0 %v426_v1 }
  0x26   :  { %170 = vmatpush1.bf16.msra.mxu0 %v378_v18 }
  0x27   :  { %171 = vmatprep.subr.bf16.mxu0 %v426_v1 }
  0x2a   :  { %172 = vmatpush1.bf16.msra.mxu0 %v379_v19 }
  0x2b   :  { %173 = vmatprep.subr.bf16.mxu0 %v426_v1 }
  0x2e   :  { %174 = vmatpush1.bf16.msra.mxu0 %v380_v20 }
  0x2f   :  { %175 = vmatprep.subr.bf16.mxu0 %v426_v1 }
  0x32   :  { %176 = vmatpush1.bf16.msra.mxu0 %v381_v21 }
  0x35   :  { %184 = vmatmul.mubr.bf16.vlgmr.msra.gmra.mrb[0].mxu0 %v34_v22 }
 0x108   :  { %v185_v27 = vpop.f32.mrb[0].mxu0 }
 0x109   :  { %v186_v28 = vadd.f32 %v340_v26, %v185_v27  ;;  %v187_v29 = vpop.f32.mrb[1].mxu0 }
 0x10a   :  { %v188_v30 = vpop.f32.mrb[2].mxu0 }
 0x10b   :  { %v191_v31 = vmax.f32 %v186_v28, 0.0  ;;  %v189_v32 = vpop.f32.mrb[3].mxu0 }
 0x10d   :  { %v192_v33 = vpack.c.bf16 %v191_v31, %v191_v31 }
 0x10f   :  { %363 = vmatmul.mubr.msk.bf16.vlgmr.msra.gmra.mrb[0].mxu1 %vm253_vm1, %v192_v33 }
 0x1e2   :  { %v291_v41 = vpop.f32.mrb[0].mxu1 }
 0x1e3   :  { %v292_v42 = vadd.f32 %v291_v41, %v206_v39  ;;  %v293_v43 = vpop.f32.mrb[1].mxu1 }
 0x1e4   :  { %v294_v44 = vadd.f32 %v293_v43, %v210_v40  ;;  %v295_v45 = vpop.f32.mrb[2].mxu1 }
 0x1e5   :  { %v364_v46 = vmul.f32 -1.442695, %v292_v42  ;;  %v296_v47 = vpop.f32.mrb[3].mxu1 }
 0x1e6   :  { %v365_v48 = vmul.f32 -1.442695, %v294_v44 }
 0x1e7   :  { %394 = vpow2.f32 %v364_v46 }
 0x1e8   :  { %396 = vpow2.f32 %v365_v48 }
 0x1f1   :  { %v395_v49 = vpop.eup %394 }
 0x1f2   :  { %v397_v50 = vpop.eup %396  ;;  %v304_v51 = vadd.f32 1.0, %v395_v49 }
 0x1f3   :  { %v305_v52 = vadd.f32 1.0, %v397_v50 }
 0x1f4   :  { %398 = vrcp.f32 %v304_v51 }
 0x1f5   :  { %400 = vrcp.f32 %v305_v52 }
 0x1fe   :  { %v399_v56 = vpop.eup %398 }
 0x1ff   :  { %v401_v58 = vpop.eup %400 }
 0x200   :  { %v312_v59 = vcombine.low %v399_v56, %v401_v58 }
 0x202   :  { %v319_v60 = vrot.slane %v312_v59, %v318_v57 }
 0x204   :  { %324 = vst.msk [vmem:[#allocation2] sm:$0xf] %vm323_vm4, %v319_v60 }
 0x205   :  { %413 = shalt.err (!%p410_p4)
}
 0x206   :  { %s414_s15 = scalar_lea.hbm %s548_s5, 64 }
 0x207   :  { %p415_p5 = scmp.ne.s32.totalorder %s548_s5, %s414_s15  ;;  %p418_p6 = scmp.lt.u32.totalorder %s414_s15, %s548_s5 }
 0x209   :  { %p420_p7 = pnand %p418_p6, %p415_p5 }
 0x20b   :  { %423 = shalt.err (!%p420_p7)
}
 0x20c   :  { %334 = dma.vmem_to_hbm [thread:$0]  %s332_s4, 64, %s548_s5, [#allocation3]  }
 0x20d   :  { %424 = dma.done.wait [#allocation3], 64  }
 0x20e   :  { %425 = vsyncadd [#allocation3], 4294967232 }
 0x20f   :  { %338 = vsyncpa [#allocation3], 1 }

</bundles_post_ra>
